<compile_context>
chip_gen: v5e
topology: v5e:2x2
jax: 0.10.0
libtpu: 0.0.40
codegen_flags: <defaults>
</compile_context>

<pallas_src>
import jax
import jax.numpy as jnp
from jax.experimental import pallas as pl
from jax.experimental.pallas import tpu as pltpu


# ---------------------------------------------------------------------------
# Pallas kernels
# ---------------------------------------------------------------------------
def _conv1x1_kernel(x_ref, w_ref, b_ref, o_ref, acc_ref):
    # x_ref: (Bt, tk, hw_t)   w_ref: (C_out, tk)
    # b_ref: (C_out, 1)       o_ref / acc_ref: (Bt, C_out, hw_t)
    k = pl.program_id(2)

    @pl.when(k == 0)
    def _init():
        acc_ref[...] = jnp.zeros_like(acc_ref)

    w = w_ref[...]
    for i in range(x_ref.shape[0]):          # static unroll over small Bt
        acc_ref[i] += jnp.dot(w, x_ref[i], preferred_element_type=jnp.float32)

    @pl.when(k == pl.num_programs(2) - 1)
    def _finish():
        o_ref[...] = (acc_ref[...] + b_ref[...][None, :, :]).astype(o_ref.dtype)


def _pad_channels_kernel(x_ref, o_ref):
    # x_ref: (Bt, C_in, hw_t)   o_ref: (Bt, C_out, hw_t)
    bt, c_in, hw_t = x_ref.shape
    c_out = o_ref.shape[1]
    x = x_ref[...].astype(o_ref.dtype)
    zeros = jnp.zeros((bt, c_out - c_in, hw_t), o_ref.dtype)
    # Single unmasked full-block store (no split sublane-masked writes).
    o_ref[...] = jnp.concatenate([x, zeros], axis=1)


# ---------------------------------------------------------------------------
# Generation-aware VMEM budgeting & tiling helpers
# ---------------------------------------------------------------------------
def _tpu_limits():
    """(compute-block VMEM budget, vmem_limit_bytes) per TPU generation."""
    phys = 128 * 1024 * 1024
    try:
        info = pltpu.get_tpu_info()
        phys = int(getattr(info, "vmem_capacity_bytes", phys) or phys)
    except Exception:
        pass
    if phys <= 80 * 1024 * 1024:
        # v7x-class: 64 MiB physical per TensorCore -> stay conservative.
        return 14 * 1024 * 1024, 32 * 1024 * 1024
    # v5e / v6e: 128 MiB physical -> allow bigger tiles, raise the scoped limit.
    return 24 * 1024 * 1024, 48 * 1024 * 1024


def _pick_k_tile(c_in, c_out, itemsize, budget):
    """C_in reduction tile.  Full C_in unless the (double-buffered) weight
    block would dominate VMEM; K tiles are multiples of 128 dividing C_in."""
    if 2 * c_out * c_in * itemsize <= budget // 3 and c_in <= 2048:
        return c_in
    for tk in (1024, 512, 256, 128):
        if c_in % tk == 0 and 2 * c_out * tk * itemsize <= budget // 3:
            return tk
    for tk in (1024, 512, 256, 128):
        if c_in % tk == 0:
            return tk
    return c_in


def _pick_hw_tile(hw, cap_cols):
    """Return (hw_pad, hw_t): hw_t is a lane-dense (multiple-of-128) tile that
    divides hw_pad >= hw.  Prefers a tile dividing hw exactly (no padding)."""
    if hw % 128 == 0:
        # Largest multiple of 128 <= cap that divides hw exactly (any multiple
        # of 128, not just powers of two).
        t = min(cap_cols, hw)
        t -= t % 128
        while t >= 128:
            if hw % t == 0:
                break
            t -= 128
        if t >= min(256, hw):            # good enough -> no padding, no copies
            return hw, t
    # Otherwise pad hw up to a multiple of a lane-dense tile; slice afterwards.
    hw_t = max(128, min(cap_cols, pl.cdiv(hw, 128) * 128))
    hw_pad = pl.cdiv(hw, hw_t) * hw_t
    return hw_pad, hw_t


def _plan_tiles(b, hw, per_col_bytes, fixed_bytes, budget):
    """Choose (hw_pad, hw_t, n_hw, bt).

    per_col_bytes: VMEM cost per hw column per batch row (double-buffered in +
    out blocks + accumulator).  fixed_bytes: per-step cost of resident blocks
    (double-buffered weight + bias)."""
    avail = max(budget - fixed_bytes, 1 << 20)
    cap_cols = max(128, (avail // max(per_col_bytes, 1) // 128) * 128)
    cap_cols = min(cap_cols, 8192)                  # diminishing returns past this
    hw_pad, hw_t = _pick_hw_tile(hw, cap_cols)
    n_hw = hw_pad // hw_t
    # v7x has 2 TensorCores: prefer >= 2 grid iterations on the parallel axes.
    if b * n_hw < 2 and hw_t % 256 == 0:
        hw_t //= 2
        n_hw = hw_pad // hw_t
    # Grow the batch tile while the per-step payload would otherwise be tiny
    # (amortizes the ~0.35us per-step pipeline overhead), without shrinking the
    # grid below 2 iterations or blowing the VMEM budget.
    bt = 1
    while (bt < b and b % (bt * 2) == 0
           and (bt * 2) * per_col_bytes * hw_t + fixed_bytes <= budget
           and bt * per_col_bytes * hw_t < (2 << 20)
           and (b // (bt * 2)) * n_hw >= 2):
        bt *= 2
    return hw_pad, hw_t, n_hw, bt


# ---------------------------------------------------------------------------
# Wrappers (free reshapes only — no transposes)
# ---------------------------------------------------------------------------
def conv1x1_pallas(x_nchw, weight, bias):
    """1x1 convolution.  weight: (C_out, C_in), bias: (C_out,).  x: NCHW."""
    b, c_in, h, w = x_nchw.shape
    c_out = weight.shape[0]
    hw = h * w
    x3 = x_nchw.reshape(b, c_in, hw)                 # free reshape of NCHW
    itemsize = x3.dtype.itemsize
    budget, vmem_limit = _tpu_limits()

    tk = _pick_k_tile(c_in, c_out, itemsize, budget)
    n_k = c_in // tk

    fixed = 2 * c_out * tk * itemsize + 2 * c_out * 4          # weight + bias
    per_col = 2 * tk * itemsize + 2 * c_out * itemsize + 4 * c_out
    hw_pad, hw_t, n_hw, bt = _plan_tiles(b, hw, per_col, fixed, budget)

    if hw_pad != hw:                                  # lane-dense padding
        x3 = jnp.pad(x3, ((0, 0), (0, 0), (0, hw_pad - hw)))

    # NOTE: weights follow the activation dtype (bf16 weights for bf16
    # activations) — intentional; keeps the MXU fast path.  Bias stays f32.
    w_mat = weight.astype(x3.dtype)
    b_col = bias.astype(jnp.float32).reshape(c_out, 1)

    y3 = pl.pallas_call(
        _conv1x1_kernel,
        out_shape=jax.ShapeDtypeStruct((b, c_out, hw_pad), x3.dtype),
        grid=(b // bt, n_hw, n_k),
        in_specs=[
            pl.BlockSpec((bt, tk, hw_t), lambda bi, j, k: (bi, k, j)),
            pl.BlockSpec((c_out, tk), lambda bi, j, k: (0, k)),
            pl.BlockSpec((c_out, 1), lambda bi, j, k: (0, 0)),
        ],
        out_specs=pl.BlockSpec((bt, c_out, hw_t), lambda bi, j, k: (bi, 0, j)),
        scratch_shapes=[pltpu.VMEM((bt, c_out, hw_t), jnp.float32)],
        compiler_params=pltpu.CompilerParams(
            dimension_semantics=("parallel", "parallel", "arbitrary"),
            vmem_limit_bytes=vmem_limit),
    )(x3, w_mat, b_col)

    if hw_pad != hw:
        y3 = y3[:, :, :hw]
    return y3.reshape(b, c_out, h, w)


def pad_channels_pallas(x_nchw, c_out):
    """Zero-pad the channel axis from C_in to C_out."""
    b, c_in, h, w = x_nchw.shape
    hw = h * w
    x3 = x_nchw.reshape(b, c_in, hw)
    itemsize = x3.dtype.itemsize
    budget, vmem_limit = _tpu_limits()

    per_col = 2 * c_in * itemsize + 2 * c_out * itemsize
    hw_pad, hw_t, n_hw, bt = _plan_tiles(b, hw, per_col, 0, budget)

    if hw_pad != hw:
        x3 = jnp.pad(x3, ((0, 0), (0, 0), (0, hw_pad - hw)))

    y3 = pl.pallas_call(
        _pad_channels_kernel,
        out_shape=jax.ShapeDtypeStruct((b, c_out, hw_pad), x3.dtype),
        grid=(b // bt, n_hw),
        in_specs=[pl.BlockSpec((bt, c_in, hw_t), lambda bi, j: (bi, 0, j))],
        out_specs=pl.BlockSpec((bt, c_out, hw_t), lambda bi, j: (bi, 0, j)),
        compiler_params=pltpu.CompilerParams(
            dimension_semantics=("parallel", "parallel"),
            vmem_limit_bytes=vmem_limit),
    )(x3)

    if hw_pad != hw:
        y3 = y3[:, :, :hw]
    return y3.reshape(b, c_out, h, w)


class AlignPallas:
    """JAX/Pallas equivalent of the PyTorch Align module."""

    def __init__(self, c_in, c_out, key):
        self.c_in = c_in
        self.c_out = c_out
        self.weight = None
        self.bias = None
        if c_in > c_out:
            # nn.Conv2d default init: uniform(+/- 1/sqrt(fan_in)), fan_in = c_in*1*1
            kw, kb = jax.random.split(key)
            bound = 1.0 / jnp.sqrt(float(c_in))
            self.weight = jax.random.uniform(
                kw, (c_out, c_in), jnp.float32, minval=-bound, maxval=bound)
            self.bias = jax.random.uniform(
                kb, (c_out,), jnp.float32, minval=-bound, maxval=bound)

    def __call__(self, x_nchw):
        if self.c_in > self.c_out:
            return conv1x1_pallas(x_nchw, self.weight, self.bias)
        if self.c_in < self.c_out:
            return pad_channels_pallas(x_nchw, self.c_out)
        # Identity: PyTorch returns x unchanged; a Pallas copy would only add
        # HBM traffic.
        return x_nchw


# ---------------------------------------------------------------------------
# Reference (pure JAX) for verification
# ---------------------------------------------------------------------------
def align_ref(x_nchw, c_in, c_out, weight, bias):
    if c_in > c_out:
        y = jnp.einsum("bchw,oc->bohw", x_nchw, weight) + bias[None, :, None, None]
        return y.astype(x_nchw.dtype)
    if c_in < c_out:
        return jnp.pad(x_nchw, ((0, 0), (0, c_out - c_in), (0, 0), (0, 0)))
    return x_nchw


if __name__ == "__main__":
    key = jax.random.PRNGKey(0)
    k_conv, k_x1, k_x2, k_x3 = jax.random.split(key, 4)

    B, H, W = 2, 16, 16

    # Case 1: c_in > c_out  -> 1x1 conv (matmul path)
    c_in, c_out = 8, 4
    align_conv = AlignPallas(c_in, c_out, k_conv)
    x1 = jax.random.normal(k_x1, (B, c_in, H, W), jnp.float32)
    y1 = jax.block_until_ready(align_conv(x1))
    y1_ref = align_ref(x1, c_in, c_out, align_conv.weight, align_conv.bias)
    assert y1.shape == (B, c_out, H, W)
    assert jnp.allclose(y1, y1_ref, atol=1e-5, rtol=1e-5)

    # Case 2: c_in < c_out  -> channel zero-pad
    c_in, c_out = 4, 8
    align_pad = AlignPallas(c_in, c_out, k_conv)
    x2 = jax.random.normal(k_x2, (B, c_in, H, W), jnp.float32)
    y2 = jax.block_until_ready(align_pad(x2))
    y2_ref = align_ref(x2, c_in, c_out, None, None)
    assert y2.shape == (B, c_out, H, W)
    assert jnp.allclose(y2, y2_ref)

    # Case 3: c_in == c_out -> identity (returns input unchanged)
    c_in = c_out = 4
    align_id = AlignPallas(c_in, c_out, k_conv)
    x3 = jax.random.normal(k_x3, (B, c_in, H, W), jnp.float32)
    y3 = jax.block_until_ready(align_id(x3))
    assert jnp.allclose(y3, x3)

    # Case 4: non-128-multiple spatial size exercises the lane-pad path.
    x4 = jax.random.normal(k_x1, (B, 8, 10, 10), jnp.float32)   # hw = 100
    align_conv2 = AlignPallas(8, 4, k_conv)
    y4 = jax.block_until_ready(align_conv2(x4))
    y4_ref = align_ref(x4, 8, 4, align_conv2.weight, align_conv2.bias)
    assert jnp.allclose(y4, y4_ref, atol=1e-5, rtol=1e-5)

    print("KERNEL_OK")
</pallas_src>

<mosaic_0001>
module attributes {stable_mosaic.version = 11 : i64} {
  func.func @_conv1x1_kernel(%arg0: i32, %arg1: i32, %arg2: i32, %arg3: memref<1x8x256xf32, #tpu.memory_space<vmem>>, %arg4: memref<4x8xf32, #tpu.memory_space<vmem>>, %arg5: memref<4x1xf32, #tpu.memory_space<vmem>>, %arg6: memref<1x4x256xf32, #tpu.memory_space<vmem>>, %arg7: memref<1x4x256xf32, #tpu.memory_space<vmem>>) attributes {dimension_semantics = [#tpu.dimension_semantics<parallel>, #tpu.dimension_semantics<parallel>, #tpu.dimension_semantics<arbitrary>], iteration_bounds = array<i64: 2, 1, 1>, scalar_prefetch = 0 : i64, scratch_operands = 1 : i64, tpu.core_type = #tpu.core_type<tc>, window_params = [{transform_indices = @transform_0, window_bounds = array<i64: 1, 8, 256>}, {transform_indices = @transform_1, window_bounds = array<i64: 4, 8>}, {pipeline_mode = #tpu.pipeline_mode<synchronous>, transform_indices = @transform_2, window_bounds = array<i64: 4, 1>}, {transform_indices = @transform_3, window_bounds = array<i64: 1, 4, 256>}]} {
    %c0_i32 = arith.constant 0 : i32
    %0 = arith.cmpi eq, %arg2, %c0_i32 : i32
    %1 = arith.extui %0 : i1 to i32
    %c0_i32_0 = arith.constant 0 : i32
    %2 = arith.cmpi ne, %1, %c0_i32_0 : i32
    scf.if %2 {
      %cst_13 = arith.constant 0.000000e+00 : f32
      %16 = vector.broadcast %cst_13 : f32 to vector<1x4x256xf32>
      %c0_14 = arith.constant 0 : index
      %c0_15 = arith.constant 0 : index
      %c0_16 = arith.constant 0 : index
      %17 = vector.load %arg7[%c0_14, %c0_15, %c0_16] : memref<1x4x256xf32, #tpu.memory_space<vmem>>, vector<1x4x256xf32>
      tpu.vector_store %arg7[%c0_14, %c0_15, %c0_16], %16 {strides = array<i32>} : memref<1x4x256xf32, #tpu.memory_space<vmem>>, vector<1x4x256xf32>,
    } else {
    }
    %c0 = arith.constant 0 : index
    %c0_1 = arith.constant 0 : index
    %3 = vector.load %arg4[%c0, %c0_1] : memref<4x8xf32, #tpu.memory_space<vmem>>, vector<4x8xf32>
    %c0_2 = arith.constant 0 : index
    %c0_3 = arith.constant 0 : index
    %c0_4 = arith.constant 0 : index
    %4 = vector.load %arg7[%c0_2, %c0_3, %c0_4] : memref<1x4x256xf32, #tpu.memory_space<vmem>>, vector<1x4x256xf32>
    %5 = vector.shape_cast %4 : vector<1x4x256xf32> to vector<4x256xf32>
    %c0_5 = arith.constant 0 : index
    %c0_6 = arith.constant 0 : index
    %c0_7 = arith.constant 0 : index
    %6 = vector.load %arg3[%c0_5, %c0_6, %c0_7] : memref<1x8x256xf32, #tpu.memory_space<vmem>>, vector<1x8x256xf32>
    %7 = vector.shape_cast %6 : vector<1x8x256xf32> to vector<8x256xf32>
    %cst = arith.constant dense<0.000000e+00> : vector<4x256xf32>
    %8 = tpu.matmul %3, %7, %cst {dimension_numbers = #tpu.dot_dimension_numbers<[1], [0], [0], [1], [0, 0, 1, 1], [], []>} : vector<4x8xf32>, vector<8x256xf32>, vector<4x256xf32> -> vector<4x256xf32>
    %9 = arith.addf %5, %8 : vector<4x256xf32>
    %c0_8 = arith.constant 0 : index
    %c0_9 = arith.constant 0 : index
    %c0_10 = arith.constant 0 : index
    %10 = vector.load %arg7[%c0_8, %c0_9, %c0_10] : memref<1x4x256xf32, #tpu.memory_space<vmem>>, vector<1x4x256xf32>
    %11 = vector.shape_cast %10 : vector<1x4x256xf32> to vector<4x256xf32>
    %12 = vector.shape_cast %9 : vector<4x256xf32> to vector<1x4x256xf32>
    tpu.vector_store %arg7[%c0_8, %c0_9, %c0_10], %12 {strides = array<i32>} : memref<1x4x256xf32, #tpu.memory_space<vmem>>, vector<1x4x256xf32>,
    %c0_i32_11 = arith.constant 0 : i32
    %13 = arith.cmpi eq, %arg2, %c0_i32_11 : i32
    %14 = arith.extui %13 : i1 to i32
    %c0_i32_12 = arith.constant 0 : i32
    %15 = arith.cmpi ne, %14, %c0_i32_12 : i32
    scf.if %15 {
      %c0_13 = arith.constant 0 : index
      %c0_14 = arith.constant 0 : index
      %c0_15 = arith.constant 0 : index
      %16 = vector.load %arg7[%c0_13, %c0_14, %c0_15] : memref<1x4x256xf32, #tpu.memory_space<vmem>>, vector<1x4x256xf32>
      %c0_16 = arith.constant 0 : index
      %c0_17 = arith.constant 0 : index
      %17 = vector.load %arg5[%c0_16, %c0_17] : memref<4x1xf32, #tpu.memory_space<vmem>>, vector<4x1xf32>
      %18 = vector.shape_cast %17 : vector<4x1xf32> to vector<1x4x1xf32>
      %19 = vector.broadcast %18 : vector<1x4x1xf32> to vector<1x4x256xf32>
      %20 = arith.addf %16, %19 : vector<1x4x256xf32>
      %c0_18 = arith.constant 0 : index
      %c0_19 = arith.constant 0 : index
      %c0_20 = arith.constant 0 : index
      %21 = vector.load %arg6[%c0_18, %c0_19, %c0_20] : memref<1x4x256xf32, #tpu.memory_space<vmem>>, vector<1x4x256xf32>
      tpu.vector_store %arg6[%c0_18, %c0_19, %c0_20], %20 {strides = array<i32>} : memref<1x4x256xf32, #tpu.memory_space<vmem>>, vector<1x4x256xf32>,
    } else {
    }
    return
  }
  func.func @transform_0(%arg0: i32, %arg1: i32, %arg2: i32) -> (i32, i32, i32) {
    %c0_i32 = arith.constant 0 : i32
    return %arg0, %arg2, %arg1 : i32, i32, i32
  }
  func.func @transform_1(%arg0: i32, %arg1: i32, %arg2: i32) -> (i32, i32) {
    %c0_i32 = arith.constant 0 : i32
    %c0_i32_0 = arith.constant 0 : i32
    return %c0_i32, %arg2 : i32, i32
  }
  func.func @transform_2(%arg0: i32, %arg1: i32, %arg2: i32) -> (i32, i32) {
    %c0_i32 = arith.constant 0 : i32
    %c0_i32_0 = arith.constant 0 : i32
    %c0_i32_1 = arith.constant 0 : i32
    return %c0_i32, %c0_i32_0 : i32, i32
  }
  func.func @transform_3(%arg0: i32, %arg1: i32, %arg2: i32) -> (i32, i32, i32) {
    %c0_i32 = arith.constant 0 : i32
    %c0_i32_0 = arith.constant 0 : i32
    return %arg0, %c0_i32, %arg1 : i32, i32, i32
  }
}

</mosaic_0001>

<bundles_post_ra>
// kernel: tpu_custom_call.1
= control target key start
LH: loop header
LB: loop body
LE: loop exit
PB: predicated region body
PF: predicated region fallthrough
CT: control target
= control target key end

     0   :  { %8 = vsyncpa [#allocation4], 0  ;;  %s785_s0 = inlined_call_operand.hbm [shape: f32[2,8,256], index: 0, kind: input, shape index: {}]   ;;  %s786_s1 = inlined_call_operand.vmem [shape: f32[4,8], index: 1, kind: input, shape index: {}]   ;;  %s787_s2 = inlined_call_operand.vmem [shape: f32[4,1], index: 2, kind: input, shape index: {}]   ;;  %s788_s3 = inlined_call_operand.hbm [shape: f32[2,4,256], index: 3, kind: output, shape index: {}]  }
   0x1   :  { %10 = vsyncpa [#allocation4 + $0x1], 0 }
   0x2   :  { %11 = vsyncpa [#allocation5], 0 }
   0x3   :  { %13 = vsyncpa [#allocation5 + $0x1], 0  ;;  %s658_s12 = smov 0   ;;  %s660_s13 = smov 0  }
   0x4   :  { %s662_s14 = smov 0   ;;  %s664_s15 = smov 0  }
   0x5   :  { %s666_s16 = smov 0   ;;  %s668_s17 = smov 0  }
   0x6 LB: > { %s437_s18 = sadd.s32 4294967295, %s634_s17   ;;  %s438_s19 = sadd.s32 4294967294, %s634_s17   ;;  %s634_s17 = sphi %s668_s17, %s19_s17   ;;  %s630_s16 = sphi %s666_s16, %s797_s16   ;;  %s626_s15 = sphi %s664_s15, %s796_s15   ;;  %s622_s14 = sphi %s662_s14, %s795_s14   ;;  %s618_s13 = sphi %s660_s13, %s794_s13   ;;  %s614_s12 = sphi %s658_s12, %s793_s12  }
   0x7   : > { %s38_s20 = sadd.s32 1, %s630_s16  ;;  %s49_s21 = sadd.s32 1, %s622_s14 }
   0x8   : > { %p40_p0 = scmp.ge.s32.totalorder %s38_s20, 2  ;;  %p56_p1 = scmp.ne.s32.totalorder %s622_s14, %s618_s13 }
   0x9   : > { %p57_p2 = scmp.eq.s32.totalorder %s634_s17, 0  ;;  %p62_p3 = scmp.ne.s32.totalorder %s618_s13, %s614_s12 }
   0xa   : > { %s799_s20 = smov (%p40_p0, %s38_s20), 0  ;;  %p63_p5 = scmp.eq.s32.totalorder %s437_s18, 0 }
   0xb   : > { %p699_p4 = por %p57_p2, %p56_p1  ;;  %s42_s23 = ssub.s32 %s630_s16, %s799_s20 }
   0xc   : > { %p135_p6 = scmp.eq.s32.totalorder %s437_s18, 1  ;;  %p47_p7 = scmp.eq.s32.totalorder %s42_s23, 0 }
   0xd   : > { %p705_p8 = por %p63_p5, %p62_p3  ;;  %p141_p10 = scmp.eq.s32.totalorder %s438_s19, 1 }
   0xe   : > { %p709_p9 = por %p135_p6, %p56_p1  ;;  %p441_p12 = scmp.ge.s32.totalorder %s634_s17, 2 }
   0xf   : > { %s714_s26 = scalar_select %p47_p7, %s622_s14, %s49_s21  }
  0x10   : > { %p716_p11 = por %p141_p10, %p62_p3  ;;  %p469_p13 = scmp.lt.s32.totalorder %s634_s17, 2 }
  0x11   : > { %s171_s28 = sand.u32 1, %s622_s14   ;;  %s455_s30 = sshll.u32 %s630_s16, 4 }
  0x12   : > { %s442_s29 = sshll.u32 %s171_s28, 4  ;;  %s184_s6 = scalar_lea.hbm %s785_s0, %s455_s30 }
  0x13   : > { %s175_s7 = scalar_lea.vmem [#allocation3], %s442_s29  ;;  %s186_s9 = sshll.u32 %s184_s6, 4  ;;  %s187_s9 = int_to_ptr.hbm [resolvable:$true] %s186_s9 }
  0x14   : > { %s188_s8 = sshll.u32 %s175_s7, 4  ;;  %p462_p0 = pnand %p469_p13, %p699_p4  ;;  %s189_s8 = int_to_ptr.vmem [resolvable:$true] %s188_s8 }
  0x15   : > { %p445_p1 = scmp.ge.s32.totalorder %s634_s17, 1  ;;  %p193_p2 = scmp.lt.s32.totalorder %s634_s17, 3 }
  0x16   : > { %s172_s10 = scalar_lea.sflag [#allocation4], %s171_s28 }
  0x17   : > { %464 = dma.hbm_to_vmem [thread:$0]  (!%p462_p0), %s187_s9, 256, %s189_s8, %s172_s10  }
  0x18   : > { %p194_p3 = pnand %p445_p1, %p193_p2 }
  0x19   : > { %s732_s11 = sand.u32 (!%p194_p3), 1, %s618_s13  }
  0x1a   : > { %197 = sbr.rel (%p194_p3) target bundleno = 168 (0xa8), region = 32  ;;  %s446_s18 = sshll.u32 (!%p194_p3), %s732_s11, 4 }
  0x1b   : > { %s200_s19 = scalar_lea.sflag (!%p194_p3), [#allocation4], %s732_s11  ;;  %s203_s21 = scalar_lea.vmem (!%p194_p3), [#allocation3], %s446_s18 }
  0x1f   : > { %605 = dma.done.wait (%p705_p8), %s200_s19, 256  }
  0x20   : > { %607 = vsyncadd (%p705_p8), %s200_s19, 4294967040  ;;  %v636_v0 = vmov 0   ;;  %vm246_vm0 = vcmask 64512   ;;  %v245_v1 = vld [vmem:[%s203_s21 + $0x8] sm:$0xff]  ;;  %v242_v2 = vld [vmem:[%s786_s1] sm:$0xf] }
  0x21   : > { %521 = vset.pattern.permute.xlu0 %v636_v0  ;;  %v244_v3 = vld [vmem:[%s203_s21] sm:$0xff]  ;;  %285 = vmatpush.msra.mxu1 %v245_v1  ;;  %v637_v5 = vmov 839922192   ;;  %s447_s24 = sshll.u32 %s732_s11, 3  ;;  %s456_s30 = sshll.u32 %s626_s15, 3  ;;  %vm293_vm1 = vcmask 1043456  }
  0x22   : > { %265 = vmatpush.msra.mxu0 %v244_v3  ;;  %v302_v4 = vld [vmem:[%s787_s2] sm:$0xf]  ;;  %449 = vmatmul.msk.f32.vlgmr.msra.gmra.mxu1 %vm246_vm0, %v242_v2  ;;  %v308_v6 = vunpack.c.l.s4 %v637_v5  ;;  %s328_s6 = scalar_lea.hbm %s788_s3, %s456_s30  ;;  %s230_s7 = scalar_lea.vmem [#allocation6], %s447_s24 }
  0x23   : > { %448 = vmatmul.msk.f32.vlgmr.msra.gmra.mxu0 %vm246_vm0, %v242_v2  ;;  %305 = vperm.xlu0 %521, %v302_v4   ;;  %s330_s8 = sshll.u32 %s230_s7, 4  ;;  %s332_s9 = sshll.u32 %s328_s6, 4  ;;  %s331_s8 = int_to_ptr.vmem [resolvable:$true] %s330_s8  ;;  %s333_s9 = int_to_ptr.hbm [resolvable:$true] %s332_s9 }
  0x24   : > { %v309_v7 = vunpack.c.0.s8 %v308_v6  ;;  %s315_s15 = scalar_lea.sflag [#allocation5], %s732_s11  ;;  %s566_s10 = sshra.s32 %s333_s9, 4  ;;  %s567_s10 = int_to_ptr.hbm [resolvable:$true] %s566_s10 }
  0x25   : > { %s568_s18 = scalar_lea.hbm %s567_s10, 8  ;;  %s572_s22 = scalar_lea.hbm %s788_s3, 16 }
  0x26   : > { %p569_p4 = scmp.ne.s32.totalorder %s567_s10, %s568_s18  ;;  %p573_p7 = scmp.lt.s32.totalorder %s567_s10, %s788_s3 }
  0x27   : > { %p574_p8 = scmp.lt.s32.totalorder %s572_s22, %s568_s18 }
  0x28   : > { %p570_p5 = pnand %p569_p4, %p709_p9 }
  0x29   : > { %p575_p10 = por %p574_p8, %p573_p7 }
  0x2a   : > { %p571_p6 = pneg %p570_p5 }
  0x2c   : > { %p576_p13 = pnand %p575_p10, %p571_p6 }
  0x95   : > { %v306_v8 = vpop.permute.xlu0 %305 }
  0x96   : > { %v310_v10 = vperm.slane %v306_v8, %v309_v7 }
  0x9f   : > { %v287_v9 = vpop.f32.mrf.mxu1 }
  0xa0   : > { %v267_v11 = vpop.f32.mrf.mxu0  ;;  %v292_v12 = vrot.slane %v287_v9, 4 }
  0xa2   : > { %v294_v13 = vsel %vm293_vm1, %v267_v11, %v292_v12 }
  0xa3   : > { %v312_v14 = vadd.f32 %v310_v10, %v294_v13 }
  0xa5   : > { %313 = vst [vmem:[%s230_s7] sm:$0xff] %v312_v14 }
  0xa6   : > { %579 = shalt.err (!%p576_p13)
}
  0xa7   : > { %459 = dma.vmem_to_hbm [thread:$0]  (%p709_p9), %s331_s8, 128, %s333_s9, %s315_s15  }
  0xa8 PF: > { %s344_s11 = sand.u32 1, %s614_s12   ;;  %p466_p0 = pnand %p441_p12, %p716_p11 }
  0xa9   : > { %s345_s29 = scalar_lea.sflag [#allocation5], %s344_s11 }
  0xaa   : > { %p467_p1 = pneg %p466_p0 }
  0xac   : > { %609 = dma.done.wait (%p467_p1), %s345_s29, 128  }
  0xad   : > { %611 = vsyncadd (%p467_p1), %s345_s29, 4294967168  ;;  %s19_s17 = sadd.s32 1, %s634_s17   ;;  %s793_s12 = smov %s618_s13 }
  0xae   : > { %p16_p2 = scmp.ge.s32.totalorder %s19_s17, 4   ;;  %s794_s13 = smov %s622_s14 }
  0xaf   : > { %s795_s14 = smov %s714_s26  ;;  %s796_s15 = smov %s630_s16 }
  0xb0   : > { %s797_s16 = smov %s799_s20  ;;  %18 = sbr.rel (!%p16_p2) target bundleno = 6 (0x6), region = 88 }
  0xb5   :  { %351 = vsyncpa [#allocation4], 1 }
  0xb6   :  { %353 = vsyncpa [#allocation4 + $0x1], 1 }
  0xb7   :  { %354 = vsyncpa [#allocation5], 1 }
  0xb8   :  { %356 = vsyncpa [#allocation5 + $0x1], 1 }

</bundles_post_ra>
